<compile_context>
chip_gen: v7x
topology: tpu7x:2x2x1
jax: 0.10.0
libtpu: 0.0.40
codegen_flags: <defaults>
</compile_context>

<pallas_src>
import functools

import jax
import jax.numpy as jnp
from jax import lax
from jax.experimental import pallas as pl
from jax.experimental.pallas import tpu as pltpu


def _round_up(x, k):
    return (x + k - 1) // k * k


def _log_sigmoid(x):
    # numerically stable log(sigmoid(x)), elementwise only
    return jnp.minimum(x, 0.0) - jnp.log1p(jnp.exp(-jnp.abs(x)))


def _sigmoid(x):
    # numerically stable sigmoid built from exp/where only (guaranteed lowering)
    e = jnp.exp(-jnp.abs(x))
    return jnp.where(x >= 0.0, 1.0 / (1.0 + e), e / (1.0 + e))


def _log_softmax(x, axis):
    m = jnp.max(x, axis=axis, keepdims=True)
    s = x - m
    return s - jnp.log(jnp.sum(jnp.exp(s), axis=axis, keepdims=True))


def _match_kernel(d0_ref, d1_ref, wc_ref, bc_ref,
                  scores_ref, sim_ref, scores_no_ref, *, m, n):
    tb, mp, d = d0_ref.shape          # padded rows: mp = round_up(m+1, 8)
    _, np_, _ = d1_ref.shape          # padded cols: np_ = round_up(n+1, 128)

    wc = wc_ref[...]                  # (d, DC) bf16: [wp*scale | wm | 0...]
    bc = bc_ref[...]                  # (1, DC) f32 : [bp*scale | bm | 0...]

    # --- fused projection + matchability: one MXU matmul per descriptor set
    x0 = d0_ref[...].reshape(tb * mp, d)                      # bf16
    x1 = d1_ref[...].reshape(tb * np_, d)                     # bf16
    h0 = jnp.dot(x0, wc, preferred_element_type=jnp.float32) + bc
    h1 = jnp.dot(x1, wc, preferred_element_type=jnp.float32) + bc

    md0 = h0[:, :d].reshape(tb, mp, d)                        # scaled mdesc0
    md1 = h1[:, :d].reshape(tb, np_, d)                       # scaled mdesc1
    z0 = h0[:, d:d + 1].reshape(tb, mp, 1)                    # matchability logits
    z1 = h1[:, d:d + 1].reshape(tb, np_, 1)
    z1r = jnp.swapaxes(z1, 1, 2)                              # (tb, 1, np_)

    # --- similarity: batched MXU matmul, bf16 operands, f32 accumulation
    sim = jnp.einsum('bmd,bnd->bmn',
                     md0.astype(jnp.bfloat16), md1.astype(jnp.bfloat16),
                     preferred_element_type=jnp.float32)      # (tb, mp, np_)

    # --- double log-softmax restricted to the valid (m, n) region.
    # Masks are built once at 2-D (mp, np_) and broadcast over batch.
    r = lax.broadcasted_iota(jnp.int32, (mp, np_), 0)
    c = lax.broadcasted_iota(jnp.int32, (mp, np_), 1)
    valid = (r < m) & (c < n)
    sim_m = jnp.where(valid, sim, -1e30)                      # pad -> ~ -inf
    scores0 = _log_softmax(sim_m, axis=2)                     # over n
    scores1 = _log_softmax(sim_m, axis=1)                     # over m
    certainties = _log_sigmoid(z0) + _log_sigmoid(z1r)
    inner = scores0 + scores1 + certainties

    col_border = _log_sigmoid(-z0)                            # goes to column n
    row_border = _log_sigmoid(-z1r)                           # goes to row m

    # assemble the bordered matrix (zero corner) fully in-register
    scores = jnp.where(
        valid, inner,
        jnp.where((r < m) & (c == n), col_border,
                  jnp.where((r == m) & (c < n), row_border, 0.0)))

    # --- unpadded, final-shape stores (masked tail stores; no wrapper slices)
    scores_out = scores[:, :m + 1, :n + 1]
    scores_ref[...] = scores_out
    sim_ref[...] = sim[:, :m, :n]
    scores_no_ref[...] = _sigmoid(scores_out)


def _vmem_capacity_bytes():
    try:
        return int(pltpu.get_tpu_info().vmem_capacity_bytes)
    except Exception:
        return 128 * 1024 * 1024      # v5e/v6e default if the query is unavailable


def match_assignment(desc0, desc1, wp, bp, wm, bm, *, block_batch=None):
    """Pallas implementation of MatchAssignment.forward.

    desc0: (b, m, d) f32, desc1: (b, n, d) f32
    wp: (d, d) f32, pre-transposed so mdesc = desc @ wp + bp  (== nn.Linear)
    bp: (1, d), wm: (1, d), bm: (1, 1)
    returns (scores (b, m+1, n+1), sim (b, m, n), scores_no (b, m+1, n+1))
    """
    b, m, d = desc0.shape
    _, n, _ = desc1.shape

    mp = _round_up(m + 1, 8)          # sublane-aligned rows (holds the border row)
    np_ = _round_up(n + 1, 128)       # lane-aligned cols   (holds the border col)
    dc = _round_up(d + 1, 128)        # projection cols + matchability column
    scale = jnp.float32(float(d) ** -0.25)

    # Fold the 1/d**0.25 scale into the projection weight/bias and append the
    # matchability weight/bias as one extra output column (rides the same matmul).
    wcomb = jnp.zeros((d, dc), jnp.float32)
    wcomb = wcomb.at[:, :d].set(wp * scale)
    wcomb = wcomb.at[:, d].set(wm[0])
    wcomb = wcomb.astype(jnp.bfloat16)                        # MXU operand
    bcomb = jnp.zeros((1, dc), jnp.float32)
    bcomb = bcomb.at[:, :d].set(bp * scale)
    bcomb = bcomb.at[:, d].set(bm[0, 0])

    # Zero-pad descriptors along the sequence axis to the aligned sizes and
    # cast to bf16 (halves descriptor HBM reads; accumulation stays f32).
    d0p = jnp.pad(desc0.astype(jnp.bfloat16), ((0, 0), (0, mp - m), (0, 0)))
    d1p = jnp.pad(desc1.astype(jnp.bfloat16), ((0, 0), (0, np_ - n), (0, 0)))

    # --- generation-aware VMEM sizing -------------------------------------
    vmem_cap = _vmem_capacity_bytes()
    # leave headroom for Mosaic internal scratch; cap at ~100 MiB on 128 MiB parts
    vmem_limit = int(max(16 * 1024 * 1024,
                         min(vmem_cap - 8 * 1024 * 1024, 100 * 1024 * 1024)))

    if block_batch is None:
        budget = max(vmem_cap // 3, 8 * 1024 * 1024)
        # 3 double-buffered outputs + ~8 full-size f32 temporaries per batch
        # element, plus double-buffered bf16 descriptors.
        per_batch = mp * np_ * 4 * 14 + (mp + np_) * d * 2 * 2
        cap = max(1, min(b, budget // max(per_batch, 1)))
        if b >= 2:
            cap = max(1, min(cap, b // 2))   # keep >= 2 grid steps (2 TCs on v7x)
        block_batch = max(t for t in range(1, cap + 1) if b % t == 0)
    tb = block_batch
    assert b % tb == 0, "block_batch must divide the batch size"

    kernel = functools.partial(_match_kernel, m=m, n=n)

    scores, sim, scores_no = pl.pallas_call(
        kernel,
        out_shape=(
            jax.ShapeDtypeStruct((b, m + 1, n + 1), jnp.float32),
            jax.ShapeDtypeStruct((b, m, n), jnp.float32),
            jax.ShapeDtypeStruct((b, m + 1, n + 1), jnp.float32),
        ),
        grid_spec=pltpu.PrefetchScalarGridSpec(
            num_scalar_prefetch=0,
            grid=(b // tb,),
            in_specs=[
                pl.BlockSpec((tb, mp, d), lambda i: (i, 0, 0)),
                pl.BlockSpec((tb, np_, d), lambda i: (i, 0, 0)),
                pl.BlockSpec((d, dc), lambda i: (0, 0)),
                pl.BlockSpec((1, dc), lambda i: (0, 0)),
            ],
            out_specs=[
                pl.BlockSpec((tb, m + 1, n + 1), lambda i: (i, 0, 0)),
                pl.BlockSpec((tb, m, n), lambda i: (i, 0, 0)),
                pl.BlockSpec((tb, m + 1, n + 1), lambda i: (i, 0, 0)),
            ],
        ),
        compiler_params=pltpu.CompilerParams(
            dimension_semantics=("parallel",),
            vmem_limit_bytes=vmem_limit),
    )(d0p, d1p, wcomb, bcomb)

    return scores, sim, scores_no


def _reference(desc0, desc1, wp, bp, wm, bm):
    """Pure-JAX mirror of the PyTorch module.

    Matmul operands are rounded to bf16 exactly as the kernel does (with the
    d**-0.25 scale pre-folded into the weight), so the comparison isolates the
    kernel's math from the deliberate mixed-precision choice.
    """
    d = desc0.shape[-1]
    scale = float(d) ** -0.25
    q = lambda x: x.astype(jnp.bfloat16).astype(jnp.float32)
    d0q, d1q = q(desc0), q(desc1)
    wpq, wmq = q(wp * scale), q(wm)

    md0 = d0q @ wpq + bp * scale
    md1 = d1q @ wpq + bp * scale
    sim = jnp.einsum('bmd,bnd->bmn', q(md0), q(md1))
    z0 = jnp.einsum('bmd,od->bmo', d0q, wmq) + bm[0, 0]       # (b, m, 1)
    z1 = jnp.einsum('bnd,od->bno', d1q, wmq) + bm[0, 0]       # (b, n, 1)

    certainties = jax.nn.log_sigmoid(z0) + jnp.swapaxes(jax.nn.log_sigmoid(z1), 1, 2)
    scores0 = jax.nn.log_softmax(sim, axis=2)
    scores1 = jax.nn.log_softmax(sim, axis=1)
    b, m, n = sim.shape
    scores = jnp.zeros((b, m + 1, n + 1), sim.dtype)
    scores = scores.at[:, :m, :n].set(scores0 + scores1 + certainties)
    scores = scores.at[:, :-1, -1].set(jax.nn.log_sigmoid(-z0[..., 0]))
    scores = scores.at[:, -1, :-1].set(jax.nn.log_sigmoid(-z1[..., 0]))
    scores_no = jax.nn.sigmoid(scores)
    return scores, sim, scores_no


if __name__ == "__main__":
    B, M, N, D = 2, 8, 16, 32

    key = jax.random.PRNGKey(0)
    k0, k1, k2, k3, k4, k5 = jax.random.split(key, 6)

    desc0 = jax.random.normal(k0, (B, M, D), jnp.float32)
    desc1 = jax.random.normal(k1, (B, N, D), jnp.float32)

    # nn.Linear(dim, dim) / nn.Linear(dim, 1) shaped parameters
    wp = jax.random.normal(k2, (D, D), jnp.float32) * (1.0 / jnp.sqrt(D))  # final_proj weight (pre-transposed)
    bp = jax.random.normal(k3, (1, D), jnp.float32) * 0.1                  # final_proj bias
    wm = jax.random.normal(k4, (1, D), jnp.float32) * (1.0 / jnp.sqrt(D))  # matchability weight
    bm = jax.random.normal(k5, (1, 1), jnp.float32) * 0.1                  # matchability bias

    scores, sim, scores_no = jax.block_until_ready(
        match_assignment(desc0, desc1, wp, bp, wm, bm))

    r_scores, r_sim, r_scores_no = _reference(desc0, desc1, wp, bp, wm, bm)
    assert scores.shape == (B, M + 1, N + 1) and sim.shape == (B, M, N)
    assert jnp.allclose(sim, r_sim, rtol=2e-3, atol=2e-3)
    assert jnp.allclose(scores, r_scores, rtol=2e-3, atol=2e-3)
    assert jnp.allclose(scores_no, r_scores_no, rtol=2e-3, atol=2e-3)

    print("KERNEL_OK")
</pallas_src>

<mosaic_0001>
module attributes {stable_mosaic.version = 11 : i64} {
  func.func @_match_kernel(%arg0: i32, %arg1: memref<1x16x32xbf16, #tpu.memory_space<vmem>>, %arg2: memref<1x128x32xbf16, #tpu.memory_space<vmem>>, %arg3: memref<32x128xbf16, #tpu.memory_space<vmem>>, %arg4: memref<1x128xf32, #tpu.memory_space<vmem>>, %arg5: memref<1x9x17xf32, #tpu.memory_space<vmem>>, %arg6: memref<1x8x16xf32, #tpu.memory_space<vmem>>, %arg7: memref<1x9x17xf32, #tpu.memory_space<vmem>>) attributes {dimension_semantics = [#tpu.dimension_semantics<parallel>], iteration_bounds = array<i64: 2>, scalar_prefetch = 0 : i64, scratch_operands = 0 : i64, tpu.core_type = #tpu.core_type<tc>, window_params = [{transform_indices = @transform_0, window_bounds = array<i64: 1, 16, 32>}, {transform_indices = @transform_1, window_bounds = array<i64: 1, 128, 32>}, {pipeline_mode = #tpu.pipeline_mode<synchronous>, transform_indices = @transform_2, window_bounds = array<i64: 32, 128>}, {pipeline_mode = #tpu.pipeline_mode<synchronous>, transform_indices = @transform_3, window_bounds = array<i64: 1, 128>}, {transform_indices = @transform_4, window_bounds = array<i64: 1, 9, 17>}, {transform_indices = @transform_5, window_bounds = array<i64: 1, 8, 16>}, {transform_indices = @transform_6, window_bounds = array<i64: 1, 9, 17>}]} {
    %c0 = arith.constant 0 : index
    %c0_0 = arith.constant 0 : index
    %0 = vector.load %arg3[%c0, %c0_0] : memref<32x128xbf16, #tpu.memory_space<vmem>>, vector<32x128xbf16>
    %c0_1 = arith.constant 0 : index
    %c0_2 = arith.constant 0 : index
    %1 = vector.load %arg4[%c0_1, %c0_2] : memref<1x128xf32, #tpu.memory_space<vmem>>, vector<1x128xf32>
    %c0_3 = arith.constant 0 : index
    %c0_4 = arith.constant 0 : index
    %c0_5 = arith.constant 0 : index
    %2 = vector.load %arg1[%c0_3, %c0_4, %c0_5] : memref<1x16x32xbf16, #tpu.memory_space<vmem>>, vector<1x16x32xbf16>
    %3 = vector.shape_cast %2 : vector<1x16x32xbf16> to vector<16x32xbf16>
    %c0_6 = arith.constant 0 : index
    %c0_7 = arith.constant 0 : index
    %c0_8 = arith.constant 0 : index
    %4 = vector.load %arg2[%c0_6, %c0_7, %c0_8] : memref<1x128x32xbf16, #tpu.memory_space<vmem>>, vector<1x128x32xbf16>
    %5 = vector.shape_cast %4 : vector<1x128x32xbf16> to vector<128x32xbf16>
    %cst = arith.constant dense<0.000000e+00> : vector<16x128xf32>
    %6 = tpu.matmul %3, %0, %cst {dimension_numbers = #tpu.dot_dimension_numbers<[1], [0], [0], [1], [0, 0, 1, 1], [], []>} : vector<16x32xbf16>, vector<32x128xbf16>, vector<16x128xf32> -> vector<16x128xf32>
    %7 = vector.broadcast %1 : vector<1x128xf32> to vector<16x128xf32>
    %8 = arith.addf %6, %7 : vector<16x128xf32>
    %cst_9 = arith.constant dense<0.000000e+00> : vector<128x128xf32>
    %9 = tpu.matmul %5, %0, %cst_9 {dimension_numbers = #tpu.dot_dimension_numbers<[1], [0], [0], [1], [0, 0, 1, 1], [], []>} : vector<128x32xbf16>, vector<32x128xbf16>, vector<128x128xf32> -> vector<128x128xf32>
    %10 = vector.broadcast %1 : vector<1x128xf32> to vector<128x128xf32>
    %11 = arith.addf %9, %10 : vector<128x128xf32>
    %12 = vector.extract_strided_slice %8 {offsets = [0, 0], sizes = [16, 32], strides = [1, 1]} : vector<16x128xf32> to vector<16x32xf32>
    %13 = vector.shape_cast %12 : vector<16x32xf32> to vector<1x16x32xf32>
    %14 = vector.extract_strided_slice %11 {offsets = [0, 0], sizes = [128, 32], strides = [1, 1]} : vector<128x128xf32> to vector<128x32xf32>
    %15 = vector.shape_cast %14 : vector<128x32xf32> to vector<1x128x32xf32>
    %16 = vector.extract_strided_slice %8 {offsets = [0, 32], sizes = [16, 1], strides = [1, 1]} : vector<16x128xf32> to vector<16x1xf32>
    %17 = vector.shape_cast %16 : vector<16x1xf32> to vector<1x16x1xf32>
    %18 = vector.extract_strided_slice %11 {offsets = [0, 32], sizes = [128, 1], strides = [1, 1]} : vector<128x128xf32> to vector<128x1xf32>
    %19 = vector.shape_cast %18 : vector<128x1xf32> to vector<1x128x1xf32>
    %20 = tpu.transpose %19, [0, 2, 1] : vector<1x128x1xf32> -> vector<1x1x128xf32>
    %21 = arith.truncf %13 : vector<1x16x32xf32> to vector<1x16x32xbf16>
    %22 = arith.truncf %15 : vector<1x128x32xf32> to vector<1x128x32xbf16>
    "tpu.trace_start"() <{level = 10 : i32, message = "bmd,bnd->bmn"}> : () -> ()
    %cst_10 = arith.constant dense<0.000000e+00> : vector<1x16x128xf32>
    %23 = tpu.matmul %21, %22, %cst_10 {dimension_numbers = #tpu.dot_dimension_numbers<[2], [2], [1], [1], [0, 0, 0, 1, 1, 1], [0], [0]>} : vector<1x16x32xbf16>, vector<1x128x32xbf16>, vector<1x16x128xf32> -> vector<1x16x128xf32>
    "tpu.trace_stop"() : () -> ()
    %24 = tpu.iota {dimensions = array<i32: 0>} : vector<16x128xi32>
    %25 = tpu.iota {dimensions = array<i32: 1>} : vector<16x128xi32>
    %c8_i32 = arith.constant 8 : i32
    %26 = vector.broadcast %c8_i32 : i32 to vector<16x128xi32>
    %27 = arith.cmpi slt, %24, %26 : vector<16x128xi32>
    %c16_i32 = arith.constant 16 : i32
    %28 = vector.broadcast %c16_i32 : i32 to vector<16x128xi32>
    %29 = arith.cmpi slt, %25, %28 : vector<16x128xi32>
    %30 = arith.andi %27, %29 : vector<16x128xi1>
    %cst_11 = arith.constant -1.000000e+30 : f32
    %31 = vector.shape_cast %30 : vector<16x128xi1> to vector<1x16x128xi1>
    %32 = vector.broadcast %cst_11 : f32 to vector<1x16x128xf32>
    %33 = arith.select %31, %23, %32 : vector<1x16x128xi1>, vector<1x16x128xf32>
    %cst_12 = arith.constant dense<0xFF800000> : vector<1x16xf32>
    %34 = vector.multi_reduction <maximumf>, %33, %cst_12 [2] : vector<1x16x128xf32> to vector<1x16xf32>
    %35 = vector.shape_cast %34 : vector<1x16xf32> to vector<1x16x1xf32>
    %36 = vector.broadcast %35 : vector<1x16x1xf32> to vector<1x16x128xf32>
    %37 = arith.subf %33, %36 : vector<1x16x128xf32>
    %38 = math.exp %37 : vector<1x16x128xf32>
    %cst_13 = arith.constant dense<0.000000e+00> : vector<1x16xf32>
    %39 = vector.multi_reduction <add>, %38, %cst_13 [2] : vector<1x16x128xf32> to vector<1x16xf32>
    %40 = vector.shape_cast %39 : vector<1x16xf32> to vector<1x16x1xf32>
    %41 = math.log %40 : vector<1x16x1xf32>
    %42 = vector.broadcast %41 : vector<1x16x1xf32> to vector<1x16x128xf32>
    %43 = arith.subf %37, %42 : vector<1x16x128xf32>
    %cst_14 = arith.constant dense<0xFF800000> : vector<1x128xf32>
    %44 = vector.multi_reduction <maximumf>, %33, %cst_14 [1] : vector<1x16x128xf32> to vector<1x128xf32>
    %45 = vector.shape_cast %44 : vector<1x128xf32> to vector<1x1x128xf32>
    %46 = vector.broadcast %45 : vector<1x1x128xf32> to vector<1x16x128xf32>
    %47 = arith.subf %33, %46 : vector<1x16x128xf32>
    %48 = math.exp %47 : vector<1x16x128xf32>
    %cst_15 = arith.constant dense<0.000000e+00> : vector<1x128xf32>
    %49 = vector.multi_reduction <add>, %48, %cst_15 [1] : vector<1x16x128xf32> to vector<1x128xf32>
    %50 = vector.shape_cast %49 : vector<1x128xf32> to vector<1x1x128xf32>
    %51 = math.log %50 : vector<1x1x128xf32>
    %52 = vector.broadcast %51 : vector<1x1x128xf32> to vector<1x16x128xf32>
    %53 = arith.subf %47, %52 : vector<1x16x128xf32>
    %cst_16 = arith.constant 0.000000e+00 : f32
    %54 = vector.broadcast %cst_16 : f32 to vector<1x16x1xf32>
    %55 = arith.minimumf %17, %54 : vector<1x16x1xf32>
    %56 = math.absf %17 : vector<1x16x1xf32>
    %cst_17 = arith.constant 0.000000e+00 : f32
    %57 = vector.broadcast %cst_17 : f32 to vector<1x16x1xf32>
    %58 = arith.subf %57, %56 : vector<1x16x1xf32>
    %59 = math.exp %58 : vector<1x16x1xf32>
    %60 = math.log1p %59 : vector<1x16x1xf32>
    %61 = arith.subf %55, %60 : vector<1x16x1xf32>
    %cst_18 = arith.constant 0.000000e+00 : f32
    %62 = vector.broadcast %cst_18 : f32 to vector<1x1x128xf32>
    %63 = arith.minimumf %20, %62 : vector<1x1x128xf32>
    %64 = math.absf %20 : vector<1x1x128xf32>
    %cst_19 = arith.constant 0.000000e+00 : f32
    %65 = vector.broadcast %cst_19 : f32 to vector<1x1x128xf32>
    %66 = arith.subf %65, %64 : vector<1x1x128xf32>
    %67 = math.exp %66 : vector<1x1x128xf32>
    %68 = math.log1p %67 : vector<1x1x128xf32>
    %69 = arith.subf %63, %68 : vector<1x1x128xf32>
    %70 = vector.broadcast %61 : vector<1x16x1xf32> to vector<1x16x128xf32>
    %71 = vector.broadcast %69 : vector<1x1x128xf32> to vector<1x16x128xf32>
    %72 = arith.addf %70, %71 : vector<1x16x128xf32>
    %73 = arith.addf %43, %53 : vector<1x16x128xf32>
    %74 = arith.addf %73, %72 : vector<1x16x128xf32>
    %cst_20 = arith.constant 0.000000e+00 : f32
    %75 = vector.broadcast %cst_20 : f32 to vector<1x16x1xf32>
    %76 = arith.subf %75, %17 : vector<1x16x1xf32>
    %cst_21 = arith.constant 0.000000e+00 : f32
    %77 = vector.broadcast %cst_21 : f32 to vector<1x16x1xf32>
    %78 = arith.minimumf %76, %77 : vector<1x16x1xf32>
    %79 = math.absf %76 : vector<1x16x1xf32>
    %cst_22 = arith.constant 0.000000e+00 : f32
    %80 = vector.broadcast %cst_22 : f32 to vector<1x16x1xf32>
    %81 = arith.subf %80, %79 : vector<1x16x1xf32>
    %82 = math.exp %81 : vector<1x16x1xf32>
    %83 = math.log1p %82 : vector<1x16x1xf32>
    %84 = arith.subf %78, %83 : vector<1x16x1xf32>
    %cst_23 = arith.constant 0.000000e+00 : f32
    %85 = vector.broadcast %cst_23 : f32 to vector<1x1x128xf32>
    %86 = arith.subf %85, %20 : vector<1x1x128xf32>
    %cst_24 = arith.constant 0.000000e+00 : f32
    %87 = vector.broadcast %cst_24 : f32 to vector<1x1x128xf32>
    %88 = arith.minimumf %86, %87 : vector<1x1x128xf32>
    %89 = math.absf %86 : vector<1x1x128xf32>
    %cst_25 = arith.constant 0.000000e+00 : f32
    %90 = vector.broadcast %cst_25 : f32 to vector<1x1x128xf32>
    %91 = arith.subf %90, %89 : vector<1x1x128xf32>
    %92 = math.exp %91 : vector<1x1x128xf32>
    %93 = math.log1p %92 : vector<1x1x128xf32>
    %94 = arith.subf %88, %93 : vector<1x1x128xf32>
    %c8_i32_26 = arith.constant 8 : i32
    %95 = vector.broadcast %c8_i32_26 : i32 to vector<16x128xi32>
    %96 = arith.cmpi slt, %24, %95 : vector<16x128xi32>
    %c16_i32_27 = arith.constant 16 : i32
    %97 = vector.broadcast %c16_i32_27 : i32 to vector<16x128xi32>
    %98 = arith.cmpi eq, %25, %97 : vector<16x128xi32>
    %99 = arith.andi %96, %98 : vector<16x128xi1>
    %c8_i32_28 = arith.constant 8 : i32
    %100 = vector.broadcast %c8_i32_28 : i32 to vector<16x128xi32>
    %101 = arith.cmpi eq, %24, %100 : vector<16x128xi32>
    %c16_i32_29 = arith.constant 16 : i32
    %102 = vector.broadcast %c16_i32_29 : i32 to vector<16x128xi32>
    %103 = arith.cmpi slt, %25, %102 : vector<16x128xi32>
    %104 = arith.andi %101, %103 : vector<16x128xi1>
    %cst_30 = arith.constant 0.000000e+00 : f32
    %105 = vector.shape_cast %104 : vector<16x128xi1> to vector<1x16x128xi1>
    %106 = vector.shape_cast %94 : vector<1x1x128xf32> to vector<1x1x128xf32>
    %107 = vector.broadcast %106 : vector<1x1x128xf32> to vector<1x16x128xf32>
    %108 = vector.broadcast %cst_30 : f32 to vector<1x16x128xf32>
    %109 = arith.select %105, %107, %108 : vector<1x16x128xi1>, vector<1x16x128xf32>
    %110 = vector.shape_cast %99 : vector<16x128xi1> to vector<1x16x128xi1>
    %111 = vector.shape_cast %84 : vector<1x16x1xf32> to vector<1x16x1xf32>
    %112 = vector.broadcast %111 : vector<1x16x1xf32> to vector<1x16x128xf32>
    %113 = arith.select %110, %112, %109 : vector<1x16x128xi1>, vector<1x16x128xf32>
    %114 = vector.shape_cast %30 : vector<16x128xi1> to vector<1x16x128xi1>
    %115 = arith.select %114, %74, %113 : vector<1x16x128xi1>, vector<1x16x128xf32>
    %116 = vector.extract_strided_slice %115 {offsets = [0, 0, 0], sizes = [1, 9, 17], strides = [1, 1, 1]} : vector<1x16x128xf32> to vector<1x9x17xf32>
    %c0_31 = arith.constant 0 : index
    %c0_32 = arith.constant 0 : index
    %c0_33 = arith.constant 0 : index
    %117 = vector.load %arg5[%c0_31, %c0_32, %c0_33] : memref<1x9x17xf32, #tpu.memory_space<vmem>>, vector<1x9x17xf32>
    tpu.vector_store %arg5[%c0_31, %c0_32, %c0_33], %116 {strides = array<i32>} : memref<1x9x17xf32, #tpu.memory_space<vmem>>, vector<1x9x17xf32>,
    %118 = vector.extract_strided_slice %23 {offsets = [0, 0, 0], sizes = [1, 8, 16], strides = [1, 1, 1]} : vector<1x16x128xf32> to vector<1x8x16xf32>
    %c0_34 = arith.constant 0 : index
    %c0_35 = arith.constant 0 : index
    %c0_36 = arith.constant 0 : index
    %119 = vector.load %arg6[%c0_34, %c0_35, %c0_36] : memref<1x8x16xf32, #tpu.memory_space<vmem>>, vector<1x8x16xf32>
    tpu.vector_store %arg6[%c0_34, %c0_35, %c0_36], %118 {strides = array<i32>} : memref<1x8x16xf32, #tpu.memory_space<vmem>>, vector<1x8x16xf32>,
    %120 = math.absf %116 : vector<1x9x17xf32>
    %cst_37 = arith.constant 0.000000e+00 : f32
    %121 = vector.broadcast %cst_37 : f32 to vector<1x9x17xf32>
    %122 = arith.subf %121, %120 : vector<1x9x17xf32>
    %123 = math.exp %122 : vector<1x9x17xf32>
    %cst_38 = arith.constant 0.000000e+00 : f32
    %124 = vector.broadcast %cst_38 : f32 to vector<1x9x17xf32>
    %125 = arith.cmpf oge, %116, %124 : vector<1x9x17xf32>
    %cst_39 = arith.constant 1.000000e+00 : f32
    %126 = vector.broadcast %cst_39 : f32 to vector<1x9x17xf32>
    %127 = arith.addf %126, %123 : vector<1x9x17xf32>
    %cst_40 = arith.constant 1.000000e+00 : f32
    %128 = vector.broadcast %cst_40 : f32 to vector<1x9x17xf32>
    %129 = arith.divf %128, %127 : vector<1x9x17xf32>
    %cst_41 = arith.constant 1.000000e+00 : f32
    %130 = vector.broadcast %cst_41 : f32 to vector<1x9x17xf32>
    %131 = arith.addf %130, %123 : vector<1x9x17xf32>
    %132 = arith.divf %123, %131 : vector<1x9x17xf32>
    %133 = arith.select %125, %129, %132 : vector<1x9x17xi1>, vector<1x9x17xf32>
    %c0_42 = arith.constant 0 : index
    %c0_43 = arith.constant 0 : index
    %c0_44 = arith.constant 0 : index
    %134 = vector.load %arg7[%c0_42, %c0_43, %c0_44] : memref<1x9x17xf32, #tpu.memory_space<vmem>>, vector<1x9x17xf32>
    tpu.vector_store %arg7[%c0_42, %c0_43, %c0_44], %133 {strides = array<i32>} : memref<1x9x17xf32, #tpu.memory_space<vmem>>, vector<1x9x17xf32>,
    return
  }
  func.func @transform_0(%arg0: i32) -> (i32, i32, i32) {
    %c0_i32 = arith.constant 0 : i32
    %c0_i32_0 = arith.constant 0 : i32
    %c0_i32_1 = arith.constant 0 : i32
    return %arg0, %c0_i32, %c0_i32_0 : i32, i32, i32
  }
  func.func @transform_1(%arg0: i32) -> (i32, i32, i32) {
    %c0_i32 = arith.constant 0 : i32
    %c0_i32_0 = arith.constant 0 : i32
    %c0_i32_1 = arith.constant 0 : i32
    return %arg0, %c0_i32, %c0_i32_0 : i32, i32, i32
  }
  func.func @transform_2(%arg0: i32) -> (i32, i32) {
    %c0_i32 = arith.constant 0 : i32
    %c0_i32_0 = arith.constant 0 : i32
    %c0_i32_1 = arith.constant 0 : i32
    return %c0_i32, %c0_i32_0 : i32, i32
  }
  func.func @transform_3(%arg0: i32) -> (i32, i32) {
    %c0_i32 = arith.constant 0 : i32
    %c0_i32_0 = arith.constant 0 : i32
    %c0_i32_1 = arith.constant 0 : i32
    return %c0_i32, %c0_i32_0 : i32, i32
  }
  func.func @transform_4(%arg0: i32) -> (i32, i32, i32) {
    %c0_i32 = arith.constant 0 : i32
    %c0_i32_0 = arith.constant 0 : i32
    %c0_i32_1 = arith.constant 0 : i32
    return %arg0, %c0_i32, %c0_i32_0 : i32, i32, i32
  }
  func.func @transform_5(%arg0: i32) -> (i32, i32, i32) {
    %c0_i32 = arith.constant 0 : i32
    %c0_i32_0 = arith.constant 0 : i32
    %c0_i32_1 = arith.constant 0 : i32
    return %arg0, %c0_i32, %c0_i32_0 : i32, i32, i32
  }
  func.func @transform_6(%arg0: i32) -> (i32, i32, i32) {
    %c0_i32 = arith.constant 0 : i32
    %c0_i32_0 = arith.constant 0 : i32
    %c0_i32_1 = arith.constant 0 : i32
    return %arg0, %c0_i32, %c0_i32_0 : i32, i32, i32
  }
}

</mosaic_0001>

<bundles_post_ra>
// kernel: tpu_custom_call.1
= control target key start
LH: loop header
LB: loop body
LE: loop exit
PB: predicated region body
PF: predicated region fallthrough
CT: control target
= control target key end

     0   :  { %s2316_s0 = inlined_call_operand.hbm [shape: bf16[2,16,32], index: 0, kind: input, shape index: {}]   ;;  %s2317_s1 = inlined_call_operand.hbm [shape: bf16[2,128,32], index: 1, kind: input, shape index: {}]   ;;  %s2318_s2 = inlined_call_operand.hbm [shape: bf16[32,128], index: 2, kind: input, shape index: {}]   ;;  %s2319_s3 = inlined_call_operand.hbm [shape: f32[1,128], index: 3, kind: input, shape index: {}]   ;;  %s2320_s4 = inlined_call_operand.hbm [shape: f32[2,9,17], index: 4, kind: output, shape index: {0}]   ;;  %s2321_s5 = inlined_call_operand.hbm [shape: f32[2,8,16], index: 5, kind: output, shape index: {1}]   ;;  %s2322_s6 = inlined_call_operand.hbm [shape: f32[2,9,17], index: 6, kind: output, shape index: {2}]  }
   0x1   :  { %2331 = sst [smem:[#allocation21_spill]] %s2316_s0 }
   0x2   :  { %2332 = sst [smem:[#allocation22_spill]] %s2318_s2 }
   0x3   :  { %2333 = sst [smem:[#allocation23_spill]] %s2319_s3 }
   0x4   :  { %12 = vsyncpa [#allocation3], 0 }
   0x5   :  { %14 = vsyncpa [#allocation3 + $0x1], 0 }
   0x6   :  { %15 = vsyncpa [#allocation6], 0 }
   0x7   :  { %17 = vsyncpa [#allocation6 + $0x1], 0 }
   0x8   :  { %18 = vsyncpa [#allocation9], 0 }
   0x9   :  { %19 = vsyncpa [#allocation4], 0 }
   0xa   :  { %21 = vsyncpa [#allocation4 + $0x1], 0 }
   0xb   :  { %22 = vsyncpa [#allocation12], 0 }
   0xc   :  { %24 = vsyncpa [#allocation12 + $0x1], 0  ;;  %s1801_s21 = smov 0   ;;  %s1803_s22 = smov 0  }
   0xd   :  { %s1805_s23 = smov 0   ;;  %s1807_s24 = smov 0  }
   0xe LB: > { %s1822_s25 = sadd.s32 4294967295, %s1749_s24   ;;  %s2324_s26 = sadd.s32 4294967294, %s1749_s24   ;;  %s1749_s24 = sphi %s1807_s24, %s2361_s24   ;;  %s1745_s23 = sphi %s1805_s23, %s2360_s23   ;;  %s1741_s22 = sphi %s1803_s22, %s2359_s22   ;;  %s1737_s21 = sphi %s1801_s21, %s2358_s21  }
   0xf   : > { %p50_p0 = scmp.ne.s32.totalorder %s1741_s22, %s1737_s21  ;;  %p2323_p1 = scmp.eq.s32.totalorder %s1822_s25, 0 }
  0x10   : > { %p148_p3 = scmp.eq.s32.totalorder %s2324_s26, 1  ;;  %p1235_p5 = scmp.ge.s32.totalorder %s1749_s24, 1 }
  0x11   : > { %p1833_p4 = por %p2323_p1, %p50_p0  ;;  %p207_p7 = scmp.lt.s32.totalorder %s1749_s24, 3 }
  0x12   : > { %p1838_p6 = por %p148_p3, %p50_p0  ;;  %s1751_s30 = smov [#allocation7]  }
  0x13   : > { %s2334_s27 = scalar_select %p1833_p4, 1, 0 }
  0x14   : > { %s2335_s28 = scalar_select %p1838_p6, 1, 0 }
  0x15   : > { %p1843_p8 = pnand %p1235_p5, %p207_p7  ;;  %s219_s7 = sshll.u32 %s1751_s30, 4  ;;  %s1847_s7 = int_to_ptr.vmem [resolvable:$true] %s219_s7 }
  0x16   : > { %s1752_s9 = smov [#allocation8]   ;;  %s2338_s2 = sld [smem:[#allocation22_spill]] }
  0x17   : > { %p1377_p9 = pneg %p1843_p8  ;;  %s233_s10 = sshll.u32 %s1752_s9, 4  ;;  %s1858_s10 = int_to_ptr.vmem [resolvable:$true] %s233_s10 }
  0x19   : > { %p1854_p11 = pnand %p1377_p9, %p2323_p1 }
  0x1b   : > { %p1497_p13 = pneg %p1854_p11 }
  0x1c   : > { %s1495_s13 = scalar_lea.hbm %s2338_s2, 256 }
  0x1d   : > { %p1496_p12 = scmp.ne.s32.totalorder %s2338_s2, %s1495_s13  ;;  %p1502_p5 = scmp.lt.u32.totalorder %s1495_s13, %s2338_s2 }
  0x1f   : > { %p1498_p0 = pnand %p1497_p13, %p1496_p12 }
  0x21   : > { %p1499_p3 = pneg %p1498_p0 }
  0x23   : > { %p1504_p7 = pnand %p1502_p5, %p1499_p3 }
  0x25   : > { %1507 = shalt.err (!%p1504_p7)
}
  0x26   : > { %s1508_s18 = scalar_lea.vmem %s1847_s7, 256  ;;  %p1516_p2 = scmp.lt.s32.totalorder %s1847_s7, %s1847_s7 }
  0x27   : > { %p1509_p9 = scmp.ne.s32.totalorder %s1847_s7, %s1508_s18  ;;  %p1517_p12 = scmp.lt.s32.totalorder %s1508_s18, %s1508_s18 }
  0x29   : > { %p1511_p10 = pnand %p1509_p9, %p1497_p13  ;;  %p1518_p0 = por %p1517_p12, %p1516_p2 }
  0x2b   : > { %p1512_p1 = pneg %p1511_p10 }
  0x2d   : > { %p1519_p6 = pnand %p1518_p0, %p1512_p1 }
  0x2f   : > { %1522 = shalt.err (!%p1519_p6)
}
  0x30   : > { %s2325_s19 = smov 64   ;;  %s2327_s20 = smov 4  }
  0x31   : > { %1380 = dma.hbm_to_vmem [thread:$0]  (!%p1854_p11), %s2338_s2, 256, %s1847_s7, [#allocation6], %s2325_s19, %s2325_s19, %s2327_s20  }
  0x32   : > { %s2339_s3 = sld [smem:[#allocation23_spill]] }
  0x38   : > { %s1523_s13 = scalar_lea.hbm %s2339_s3, 16 }
  0x39   : > { %p1524_p1 = scmp.ne.s32.totalorder %s2339_s3, %s1523_s13  ;;  %p1530_p10 = scmp.lt.u32.totalorder %s1523_s13, %s2339_s3 }
  0x3b   : > { %p1526_p2 = pnand %p1524_p1, %p1497_p13 }
  0x3d   : > { %p1527_p6 = pneg %p1526_p2 }
  0x3f   : > { %p1532_p3 = pnand %p1530_p10, %p1527_p6 }
  0x41   : > { %1535 = shalt.err (!%p1532_p3)
}
  0x42   : > { %s1536_s7 = scalar_lea.vmem %s1858_s10, 16  ;;  %s1543_s18 = scalar_lea.vmem %s1858_s10, 32 }
  0x43   : > { %p1537_p5 = scmp.ne.s32.totalorder %s1858_s10, %s1536_s7  ;;  %p1544_p12 = scmp.lt.s32.totalorder %s1858_s10, %s1858_s10 }
  0x44   : > { %p1545_p0 = scmp.lt.s32.totalorder %s1543_s18, %s1536_s7 }
  0x45   : > { %p1539_p7 = pnand %p1537_p5, %p1497_p13 }
  0x46   : > { %p1546_p1 = por %p1545_p0, %p1544_p12 }
  0x47   : > { %p1540_p9 = pneg %p1539_p7 }
  0x49   : > { %p1547_p2 = pnand %p1546_p1, %p1540_p9 }
  0x4b   : > { %1550 = shalt.err (!%p1547_p2)
}
  0x4c   : > { %1383 = dma.hbm_to_vmem [thread:$0]  (!%p1854_p11), %s2339_s3, 16, %s1858_s10, [#allocation9]  }
  0x4d   : > { %s1917_s11 = sadd.s32 1, %s1749_s24   ;;  %s37_s8 = sadd.s32 1, %s1745_s23 }
  0x4e   : > { %s34_s12 = ssub.s32 %s1749_s24, %s1917_s11  ;;  %p44_p13 = scmp.ne.s32.totalorder %s1745_s23, %s1741_s22 }
  0x4f   : > { %p35_p6 = scmp.eq.s32.totalorder %s34_s12, 0  ;;  %p45_p10 = scmp.eq.s32.totalorder %s1749_s24, 0 }
  0x50   : > { %p2340_p3 = scmp.eq.s32.totalorder %s1822_s25, 1  ;;  %p1403_p7 = scmp.lt.s32.totalorder %s1749_s24, 2 }
  0x51   : > { %s1933_s14 = scalar_select %p35_p6, %s1745_s23, %s37_s8  }
  0x52   : > { %p1927_p5 = por %p2340_p3, %p44_p13  ;;  %p46_p9 = por %p45_p10, %p44_p13 }
  0x53   : > { %2342 = sst [smem:[#allocation20_spill]] %s1933_s14  ;;  %s1936_s15 = sand.u32 1, %s1745_s23  }
  0x54   : > { %s2341_s13 = scalar_select %p1927_p5, 1, 0 }
  0x55   : > { %s1239_s10 = sshll.u32 %s1936_s15, 3  ;;  %s1285_s16 = sshll.u32 %s1749_s24, 7 }
  0x56   : > { %s2343_s0 = sld [smem:[#allocation21_spill]]  ;;  %s248_s30 = scalar_lea.vmem [#allocation2], %s1239_s10 }
  0x57   : > { %s255_s9 = sshll.u32 %s248_s30, 4  ;;  %p1947_p11 = pnand %p1403_p7, %p46_p9  ;;  %s1945_s9 = int_to_ptr.vmem [resolvable:$true] %s255_s9 }
  0x58   : > { %s1242_s26 = sshll.u32 %s1936_s15, 6  ;;  %s245_s19 = scalar_lea.sflag [#allocation3], %s1936_s15 }
  0x59   : > { %p1553_p0 = pneg %p1947_p11 }
  0x5c   : > { %s1943_s18 = scalar_lea.hbm %s2343_s0, %s1285_s16  ;;  %s1556_s7 = scalar_lea.hbm %s2343_s0, 256 }
  0x5d   : > { %s1551_s17 = scalar_lea.hbm %s1943_s18, 128  ;;  %p1557_p13 = scmp.lt.u32.totalorder %s1943_s18, %s2343_s0 }
  0x5e   : > { %p1552_p12 = scmp.ne.s32.totalorder %s1943_s18, %s1551_s17  ;;  %p1558_p6 = scmp.lt.u32.totalorder %s1556_s7, %s1551_s17 }
  0x5f   : > { %p1560_p3 = scmp.lt.u32.totalorder %s1551_s17, %s1943_s18 }
  0x60   : > { %p1554_p1 = pnand %p1553_p0, %p1552_p12  ;;  %p1559_p10 = por %p1558_p6, %p1557_p13 }
  0x62   : > { %p1555_p2 = pneg %p1554_p1  ;;  %p1561_p7 = por %p1560_p3, %p1559_p10 }
  0x64   : > { %p1562_p9 = pnand %p1561_p7, %p1555_p2 }
  0x66   : > { %1565 = shalt.err (!%p1562_p9)
}
  0x67   : > { %s1566_s12 = scalar_lea.vmem %s1945_s9, 128  ;;  %s1755_s10 = smov [#allocation2]  }
  0x68   : > { %p1567_p12 = scmp.ne.s32.totalorder %s1945_s9, %s1566_s12  ;;  %s1571_s16 = sshll.u32 %s1755_s10, 4  ;;  %s1572_s16 = int_to_ptr.vmem [resolvable:$false] %s1571_s16 }
  0x69   : > { %s1573_s20 = scalar_lea.vmem %s1572_s16, 256  ;;  %p1574_p4 = scmp.lt.s32.totalorder %s1945_s9, %s1572_s16 }
  0x6a   : > { %p1569_p1 = pnand %p1567_p12, %p1553_p0  ;;  %p1575_p13 = scmp.lt.s32.totalorder %s1573_s20, %s1566_s12 }
  0x6c   : > { %p1570_p5 = pneg %p1569_p1  ;;  %p1576_p6 = por %p1575_p13, %p1574_p4 }
  0x6e   : > { %p1577_p10 = pnand %p1576_p6, %p1570_p5 }
  0x70   : > { %1580 = shalt.err (!%p1577_p10)
}
  0x71   : > { %s2345_s17 = smov 4   ;;  %s2346_s7 = smov 64  }
  0x72   : > { %1387 = dma.hbm_to_vmem [thread:$0]  (!%p1947_p11), %s1943_s18, 128, %s1945_s9, %s245_s19, %s2346_s7, %s2346_s7, %s2345_s17  }
  0x73   : > { %s1286_s30 = sshll.u32 %s1749_s24, 10  ;;  %s269_s20 = scalar_lea.vmem [#allocation5], %s1242_s26 }
  0x74   : > { %s1988_s16 = scalar_lea.hbm %s2317_s1, %s1286_s30  ;;  %s276_s0 = sshll.u32 %s269_s20, 4  ;;  %s1992_s0 = int_to_ptr.vmem [resolvable:$true] %s276_s0 }
  0x75   : > { %s2347_s2 = sand.u32 1, %s1749_s24   ;;  %s1581_s14 = scalar_lea.hbm %s1988_s16, 1024 }
  0x76   : > { %s1996_s3 = scalar_lea.sflag [#allocation6], %s2347_s2  ;;  %p1582_p4 = scmp.ne.s32.totalorder %s1988_s16, %s1581_s14 }
  0x77   : > { %s1586_s15 = scalar_lea.hbm %s2317_s1, 2048  ;;  %p1587_p3 = scmp.lt.u32.totalorder %s1988_s16, %s2317_s1 }
  0x78   : > { %p1584_p5 = pnand %p1582_p4, %p1553_p0  ;;  %p1588_p7 = scmp.lt.u32.totalorder %s1586_s15, %s1581_s14 }
  0x79   : > { %p1590_p12 = scmp.lt.u32.totalorder %s1581_s14, %s1988_s16 }
  0x7a   : > { %p1585_p2 = pneg %p1584_p5  ;;  %p1589_p9 = por %p1588_p7, %p1587_p3 }
  0x7c   : > { %p1591_p1 = por %p1590_p12, %p1589_p9 }
  0x7e   : > { %p1592_p13 = pnand %p1591_p1, %p1585_p2 }
  0x80   : > { %1595 = shalt.err (!%p1592_p13)
}
  0x81   : > { %s1596_s2 = scalar_lea.vmem %s1992_s0, 1024  ;;  %s1756_s26 = smov [#allocation5]  }
  0x82   : > { %p1597_p6 = scmp.ne.s32.totalorder %s1992_s0, %s1596_s2  ;;  %s1601_s10 = sshll.u32 %s1756_s26, 4  ;;  %s1602_s10 = int_to_ptr.vmem [resolvable:$false] %s1601_s10 }
  0x83   : > { %s1603_s12 = scalar_lea.vmem %s1602_s10, 2048  ;;  %p1604_p5 = scmp.lt.s32.totalorder %s1992_s0, %s1602_s10 }
  0x84   : > { %p1599_p10 = pnand %p1597_p6, %p1553_p0  ;;  %p1605_p3 = scmp.lt.s32.totalorder %s1603_s12, %s1596_s2 }
  0x86   : > { %p1600_p4 = pneg %p1599_p10  ;;  %p1606_p7 = por %p1605_p3, %p1604_p5 }
  0x88   : > { %p1607_p9 = pnand %p1606_p7, %p1600_p4 }
  0x8a   : > { %1610 = shalt.err (!%p1607_p9)
}
  0x8b   : > { %1390 = dma.hbm_to_vmem [thread:$0]  (!%p1947_p11), %s1988_s16, 1024, %s1992_s0, %s1996_s3, %s2346_s7, %s2346_s7, %s2345_s17  }
  0x8c   : > { %288 = sbr.rel (%p1843_p8) target bundleno = 1048 (0x418), region = 36  ;;  %s2028_s14 = sand.u32 (!%p1843_p8), 1, %s1741_s22  }
  0x8d   : > { %s1246_s20 = sshll.u32 (!%p1843_p8), %s2028_s14, 3  ;;  %s291_s19 = scalar_lea.sflag (!%p1843_p8), [#allocation3], %s2028_s14 }
  0x8e   : > { %s294_s8 = scalar_lea.vmem (!%p1843_p8), [#allocation2], %s1246_s20  ;;  %p2348_p0 = scmp.ne.s32.totalorder (!%p1843_p8), %s2334_s27, 0 }
  0x93   : > { %1712 = dma.done.wait (%p2348_p0), %s291_s19, 128  }
  0x94   : > { %1714 = vsyncadd (%p2348_p0), %s291_s19, 4294967168  ;;  %s299_s0 = sand.u32 1, %s1822_s25   ;;  %s1247_s3 = sshll.u32 %s2028_s14, 6 }
  0x95   : > { %s300_s29 = scalar_lea.sflag [#allocation6], %s299_s0  ;;  %s2042_s17 = scalar_lea.vmem [#allocation5], %s1247_s3 }
  0x96   : > { %1716 = dma.done.wait (%p2348_p0), %s300_s29, 1024  }
  0x97   : > { %1718 = vsyncadd (%p2348_p0), %s300_s29, 4294966272  ;;  %p2349_p8 = scmp.eq.s32.totalorder %s1822_s25, 0 }
  0x99   : > { %1720 = dma.done.wait (%p2349_p8), [#allocation6], 256   ;;  %p2350_p11 = pmov %p2349_p8 }
  0x9a   : > { %p2351_p2 = pmov %p2349_p8 }
  0x9b   : > { %1722 = vsyncadd (%p2350_p11), [#allocation6], 4294967040 }
  0x9c   : > { %1724 = dma.done.wait (%p2351_p2), [#allocation9], 16   ;;  %p2352_p12 = pmov %p2351_p2 }
  0x9d   : > { %v1757_v0 = vmov 0.0   ;;  %vm1758_vm0 = vmmov 0   ;;  %v1450_v1 = vld [vmem:[#allocation7] sm:$0xff]   ;;  %v1451_v2 = vld [vmem:[#allocation7 + $0x8] sm:$0xff]   ;;  %v1452_v3 = vld [vmem:[%s294_s8] sm:$0xff]   ;;  %vm402_vm1 = vcmask 261120  }
  0x9e   : > { %1726 = vsyncadd (%p2352_p12), [#allocation9], 4294967280  ;;  %1311 = vmatprep.subr.bf16.mxu1 %v1757_v0  ;;  %1315 = vmatprep.mubr.msk.bf16.mxu1 %vm1758_vm0, %v1757_v0  ;;  %v1453_v4 = vld [vmem:[%s2042_s17] sm:$0xff]   ;;  %v1454_v5 = vld [vmem:[%s2042_s17 + $0x8] sm:$0xff]   ;;  %s1759_s27 = smov 96   ;;  %vm981_vm3 = vcmask 130048  }
  0x9f   : > { %1339 = vmatprep.subr.bf16.mxu0 %v1757_v0  ;;  %1355 = vmatprep.mubr.msk.bf16.mxu0 %vm1758_vm0, %v1757_v0  ;;  %v1455_v6 = vld [vmem:[%s2042_s17 + $0x10] sm:$0xff]   ;;  %v1456_v7 = vld [vmem:[%s2042_s17 + $0x18] sm:$0xff]   ;;  %v1457_v8 = vld [vmem:[%s2042_s17 + $0x20] sm:$0xff]   ;;  %s2149_s7 = scalar_lea.vmem [#allocation11], %s1246_s20  ;;  %s1280_s16 = sshll.u32 %s1822_s25, 7 }
  0xa0   : > { %1312 = vmatpush3.bf16.msra.mxu1 %v1450_v1  ;;  %v1458_v9 = vld [vmem:[%s2042_s17 + $0x28] sm:$0xff]   ;;  %v1459_v10 = vld [vmem:[%s2042_s17 + $0x30] sm:$0xff]   ;;  %v1460_v11 = vld [vmem:[%s2042_s17 + $0x38] sm:$0xff]   ;;  %s1045_s18 = sshll.u32 %s2149_s7, 4  ;;  %s2170_s30 = scalar_lea.hbm %s2321_s5, %s1280_s16  ;;  %s1046_s18 = int_to_ptr.vmem [resolvable:$true] %s1045_s18 }
  0xa1   : > { %1313 = vmatprep.subr.bf16.mxu1 %v1757_v0  ;;  %v2078_v12 = vld [vmem:[#allocation8] ss:$0 sm:$0xff]  ;;  %s2174_s2 = scalar_lea.sflag [#allocation12], %s299_s0  ;;  %s1611_s26 = scalar_lea.vmem %s1046_s18, 128 }
  0xa2   : > { %p1612_p1 = scmp.ne.s32.totalorder %s1046_s18, %s1611_s26  ;;  %p2353_p13 = scmp.ne.s32.totalorder %s2341_s13, 0 }
  0xa3   : > { %s1761_s10 = smov [#allocation11]  }
  0xa4   : > { %1314 = vmatpush3.bf16.msra.mxu1 %v1451_v2  ;;  %p1613_p6 = pnand %p1612_p1, %p2353_p13  ;;  %s1615_s12 = sshll.u32 %s1761_s10, 4  ;;  %s1616_s12 = int_to_ptr.vmem [resolvable:$false] %s1615_s12 }
  0xa5   : > { %1319 = vmatprep.subr.bf16.mxu1 %v1450_v1  ;;  %s1617_s20 = scalar_lea.vmem %s1616_s12, 256  ;;  %p1618_p4 = scmp.lt.s32.totalorder %s1046_s18, %s1616_s12 }
  0xa6   : > { %p1614_p10 = pneg %p1613_p6  ;;  %p1619_p5 = scmp.lt.s32.totalorder %s1617_s20, %s1611_s26 }
  0xa7   : > { %1316 = vmatmul.mubr.msk.bf16.vlgmr.msra.gmra.mrb[0].mxu1 %vm402_vm1, %v1452_v3 }
  0xa8   : > { %1320 = vmatpush3.bf16.msra.mxu1 %v1450_v1  ;;  %1323 = vmatprep.mubr.msk.bf16.mxu1 %vm402_vm1, %v1453_v4  ;;  %p1620_p3 = por %p1619_p5, %p1618_p4 }
  0xa9   : > { %1321 = vmatprep.subr.bf16.mxu1 %v1451_v2 }
  0xaa   : > { %p1621_p7 = pnand %p1620_p3, %p1614_p10 }
  0xac   : > { %1322 = vmatpush3.bf16.msra.mxu1 %v1451_v2 }
  0xaf   : > { %1324 = vmatmul.mubr.msk.bf16.vlgmr.msra.gmra.mrb[4].mxu1 %vm402_vm1, %v1454_v5 }
  0xb0   : > { %1327 = vmatprep.mubr.msk.bf16.mxu1 %vm402_vm1, %v1455_v6 }
  0xb7   : > { %1328 = vmatmul.mubr.msk.bf16.gmra.mrb[8].mxu1 %vm402_vm1, %v1456_v7 }
  0xb8   : > { %1331 = vmatprep.mubr.msk.bf16.mxu1 %vm402_vm1, %v1457_v8 }
  0xbf   : > { %1332 = vmatmul.mubr.msk.bf16.gmra.mrb[12].mxu1 %vm402_vm1, %v1458_v9 }
  0xc0   : > { %1335 = vmatprep.mubr.msk.bf16.mxu1 %vm402_vm1, %v1459_v10 }
  0xc7   : > { %1336 = vmatmul.mubr.msk.bf16.gmra.mrb[16].mxu1 %vm402_vm1, %v1460_v11 }
 0x17a   : > { %v440_v13 = vpop.f32.mrb[0].mxu1 }
 0x17b   : > { %v2081_v14 = vadd.f32 %v2078_v12, %v440_v13  ;;  %v1317_v15 = vpop.f32.mrb[1].mxu1 }
 0x17c   : > { %v443_v16 = vpop.f32.mrb[2].mxu1  ;;  %v781_v15 = vlaneseq }
 0x17d   : > { %v2084_v17 = vadd.f32 %v2078_v12, %v443_v16  ;;  %v1318_v18 = vpop.f32.mrb[3].mxu1  ;;  %v839_v13 = vand.u32 2147483647, %v2081_v14 }
 0x17f   : > { %v704_v19 = vpack.c.bf16 %v2084_v17, %v2081_v14  ;;  %v841_v16 = vsub.f32 0.0, %v839_v13  ;;  %v2140_v17 = vand.u32 127, %v781_v15 }
 0x181   : > { %v843_v18 = vmul.f32 1.442695, %v841_v16  ;;  %vm788_vm2 = vcmp.lt.s32.totalorder %v2140_v17, 16 }
 0x182   : > { %v1325_v20 = vpop.f32.mrb[4].mxu1 }
 0x183   : > { %v554_v21 = vadd.f32 %v1325_v20, %v2078_v12  ;;  %v545_v22 = vpop.f32.mrb[5].mxu1  ;;  %1461 = vpow2.f32 %v843_v18 }
 0x184   : > { %v546_v23 = vadd.f32 %v2078_v12, %v545_v22  ;;  %v1326_v24 = vpop.f32.mrb[6].mxu1 }
 0x185   : > { %v557_v25 = vadd.f32 %v1326_v24, %v2078_v12  ;;  %628 = vrot.lane.b32.xlu1 %v554_v21, %s1759_s27  ;;  %v548_v26 = vpop.f32.mrb[7].mxu1 }
 0x186   : > { %v549_v27 = vadd.f32 %v2078_v12, %v548_v26  ;;  %624 = vrot.lane.b32.xlu0 %v546_v23, %s1759_s27 }
 0x187   : > { %v706_v28 = vpack.c.bf16 %v557_v25, %v554_v21 }
 0x188   : > { %v705_v29 = vpack.c.bf16 %v549_v27, %v546_v23 }
 0x189   : > { %630 = vrot.lane.b32.xlu1 %v557_v25, %s1759_s27  ;;  %v720_v41 = vsel %vm402_vm1, %v706_v28, 0 }
 0x18a   : > { %v717_v30 = vsel %vm402_vm1, %v705_v29, 0  ;;  %v1329_v31 = vpop.f32.mrb[8].mxu1 }
 0x18b   : > { %1340 = vmatpush3.bf16.xpose.msra.mxu0 %v717_v30  ;;  %v561_v32 = vpop.f32.mrb[9].mxu1  ;;  %v570_v35 = vadd.f32 %v1329_v31, %v2078_v12 }
 0x18c   : > { %v562_v33 = vadd.f32 %v2078_v12, %v561_v32  ;;  %v1330_v34 = vpop.f32.mrb[10].mxu1  ;;  %1341 = vmatprep.subr.bf16.mxu0 %v1757_v0 }
 0x18d   : > { %626 = vrot.lane.b32.xlu1 %v549_v27, %s1759_s27  ;;  %v573_v36 = vadd.f32 %v1330_v34, %v2078_v12  ;;  %v564_v37 = vpop.f32.mrb[11].mxu1  ;;  %v1462_v24 = vpop.eup %1461 }
 0x18e   : > { %v565_v38 = vadd.f32 %v2078_v12, %v564_v37  ;;  %v847_v25 = vadd.f32 1.0, %v1462_v24  ;;  %v850_v26 = vmul.f32 -0.5, %v1462_v24  ;;  %v853_v29 = vand.u32 2147483647, %v1462_v24 }
 0x18f   : > { %v708_v39 = vpack.c.bf16 %v573_v36, %v570_v35 }
 0x190   : > { %v707_v40 = vpack.c.bf16 %v565_v38, %v562_v33  ;;  %1463 = vlog2.f32 %v847_v25  ;;  %v851_v28 = vadd.f32 1.0, %v850_v26  ;;  %vm854_vm4 = vcmp.lt.f32.partialorder %v853_v29, 0.0004427343 }
 0x191   : > { %636 = vrot.lane.b32.xlu1 %v570_v35, %s1759_s27  ;;  %v726_v54 = vsel %vm402_vm1, %v708_v39, 0  ;;  %v902_v35 = vsub.f32 0.0, %v2081_v14 }
 0x192   : > { %v1333_v42 = vpop.f32.mrb[12].mxu1  ;;  %v723_v46 = vsel %vm402_vm1, %v707_v40, 0  ;;  %v852_v31 = vmul.f32 %v1462_v24, %v851_v28 }
 0x193   : > { %1342 = vmatpush3.bf16.xpose.msra.mxu0 %v720_v41  ;;  %v577_v43 = vpop.f32.mrb[13].mxu1  ;;  %v586_v58 = vadd.f32 %v1333_v42, %v2078_v12 }
 0x194   : > { %1343 = vmatprep.subr.bf16.mxu0 %v1757_v0  ;;  %v1334_v44 = vpop.f32.mrb[14].mxu1  ;;  %v2114_v53 = vadd.f32 %v2078_v12, %v577_v43 }
 0x195   : > { %632 = vrot.lane.b32.xlu1 %v562_v33, %s1759_s27  ;;  %v580_v45 = vpop.f32.mrb[15].mxu1  ;;  %v589_v52 = vadd.f32 %v1334_v44, %v2078_v12  ;;  %v837_v33 = vmin.f32 %v2081_v14, 0.0 }
 0x196   : > { %v581_v50 = vadd.f32 %v2078_v12, %v580_v45 }
 0x197   : > { %v710_v60 = vpack.c.bf16 %v589_v52, %v586_v58 }
 0x198   : > { %v709_v56 = vpack.c.bf16 %v581_v50, %v2114_v53 }
 0x199   : > { %638 = vrot.lane.b32.xlu1 %v573_v36, %s1759_s27  ;;  %v732_v62 = vsel %vm402_vm1, %v710_v60, 0  ;;  %v906_v36 = vand.u32 2147483647, %v902_v35 }
 0x19a   : > { %v1337_v47 = vpop.f32.mrb[16].mxu1  ;;  %v729_v59 = vsel %vm402_vm1, %v709_v56, 0  ;;  %v1464_v27 = vpop.eup %1463 }
 0x19b   : > { %1344 = vmatpush3.bf16.xpose.msra.mxu0 %v723_v46  ;;  %v593_v48 = vpop.f32.mrb[17].mxu1  ;;  %v602_v1 = vadd.f32 %v1337_v47, %v2078_v12  ;;  %v849_v30 = vmul.f32 0.6931472, %v1464_v27  ;;  %v908_v37 = vsub.f32 0.0, %v906_v36 }
 0x19c   : > { %1345 = vmatprep.subr.bf16.mxu0 %v1757_v0  ;;  %v1338_v49 = vpop.f32.mrb[18].mxu1  ;;  %v594_v61 = vadd.f32 %v2078_v12, %v593_v48 }
 0x19d   : > { %634 = vrot.lane.b32.xlu1 %v565_v38, %s1759_s27  ;;  %v596_v51 = vpop.f32.mrb[19].mxu1  ;;  %v605_v57 = vadd.f32 %v1338_v49, %v2078_v12  ;;  %v855_v32 = vsel %vm854_vm4, %v852_v31, %v849_v30  ;;  %v910_v38 = vmul.f32 1.442695, %v908_v37 }
 0x19e   : > { %v597_v55 = vadd.f32 %v2078_v12, %v596_v51  ;;  %v1760_v12 = vmov 32   ;;  %v865_v34 = vsub.f32 %v837_v33, %v855_v32 }
 0x19f   : > { %v712_v3 = vpack.c.bf16 %v605_v57, %v602_v1  ;;  %1449 = vset.pattern.permute.xlu0 %v1760_v12  ;;  %1465 = vpow2.f32 %v910_v38 }
 0x1a0   : > { %v711_v63 = vpack.c.bf16 %v597_v55, %v594_v61 }
 0x1a1   : > { %642 = vrot.lane.b32.xlu1 %v581_v50, %s1759_s27  ;;  %v738_v4 = vsel %vm402_vm1, %v712_v3, 0 }
 0x1a2   : > { %v735_v2 = vsel %vm402_vm1, %v711_v63, 0 }
 0x1a3   : > { %1346 = vmatpush3.bf16.xpose.msra.mxu0 %v726_v54 }
 0x1a4   : > { %1347 = vmatprep.subr.bf16.mxu0 %v1757_v0 }
 0x1a5   : > { %646 = vrot.lane.b32.xlu1 %v589_v52, %s1759_s27 }
 0x1a9   : > { %650 = vrot.lane.b32.xlu1 %v597_v55, %s1759_s27  ;;  %v1466_v44 = vpop.eup %1465 }
 0x1aa   : > { %v914_v46 = vadd.f32 1.0, %v1466_v44  ;;  %v917_v49 = vmul.f32 -0.5, %v1466_v44  ;;  %v920_v54 = vand.u32 2147483647, %v1466_v44 }
 0x1ab   : > { %1348 = vmatpush3.bf16.xpose.msra.mxu0 %v729_v59  ;;  %v904_v59 = vmin.f32 %v902_v35, 0.0 }
 0x1ac   : > { %1349 = vmatprep.subr.bf16.mxu0 %v1757_v0  ;;  %v918_v52 = vadd.f32 1.0, %v917_v49  ;;  %vm921_vm5 = vcmp.lt.f32.partialorder %v920_v54, 0.0004427343 }
 0x1ad   : > { %654 = vrot.lane.b32.xlu1 %v605_v57, %s1759_s27 }
 0x1ae   : > { %v919_v56 = vmul.f32 %v1466_v44, %v918_v52 }
 0x1b3   : > { %1350 = vmatpush3.bf16.xpose.msra.mxu0 %v732_v62 }
 0x1b4   : > { %1351 = vmatprep.subr.bf16.mxu0 %v1757_v0 }
 0x1bb   : > { %1352 = vmatpush3.bf16.xpose.msra.mxu0 %v735_v2 }
 0x1bc   : > { %1353 = vmatprep.subr.bf16.mxu0 %v1757_v0 }
 0x1c3   : > { %1354 = vmatpush3.bf16.xpose.msra.mxu0 %v738_v4 }
 0x1ca   : > { %1356 = vmatmul.mubr.msk.bf16.vlgmr.msra.gmra.mrb[0].mxu0 %vm402_vm1, %v704_v19 }
 0x1f7   : > { %v629_v5 = vpop.permute.xlu1 %628 }
 0x1f8   : > { %v625_v6 = vpop.permute.xlu0 %624 }
 0x1f9   : > { %672 = vxpose.xlu1.b32.start [1/16] (narrow) %v625_v6, 8 }
 0x1fb   : > { %v631_v7 = vpop.permute.xlu1 %630 }
 0x1ff   : > { %v627_v8 = vpop.permute.xlu1 %626 }
 0x200   : > { %673 = vxpose.xlu1.b32.cont [2/16] (narrow) %v627_v8, 8 }
 0x203   : > { %v637_v9 = vpop.permute.xlu1 %636 }
 0x204   : > { %674 = vxpose.xlu1.b32.cont [3/16] (narrow) %v629_v5, 8 }
 0x207   : > { %v633_v10 = vpop.permute.xlu1 %632 }
 0x208   : > { %675 = vxpose.xlu1.b32.cont [4/16] (narrow) %v631_v7, 8 }
 0x20b   : > { %v639_v0 = vpop.permute.xlu1 %638 }
 0x20c   : > { %676 = vxpose.xlu1.b32.cont [5/16] (narrow) %v633_v10, 8 }
 0x20f   : > { %v635_v11 = vpop.permute.xlu1 %634 }
 0x210   : > { %677 = vxpose.xlu1.b32.cont [6/16] (narrow) %v635_v11, 8 }
 0x213   : > { %v643_v43 = vpop.permute.xlu1 %642 }
 0x214   : > { %678 = vxpose.xlu1.b32.cont [7/16] (narrow) %v637_v9, 8 }
 0x217   : > { %v647_v47 = vpop.permute.xlu1 %646 }
 0x218   : > { %679 = vxpose.xlu1.b32.cont [8/16] (narrow) %v639_v0, 8 }
 0x21b   : > { %v651_v50 = vpop.permute.xlu1 %650 }
 0x21f   : > { %v655_v57 = vpop.permute.xlu1 %654 }
 0x29d   : > { %v774_v19 = vpop.f32.mrb[0].mxu0 }
 0x29e   : > { %v2145_v20 = vsel %vm788_vm2, %v774_v19, -1e+30  ;;  %982 = vst.msk [vmem:[%s2149_s7] sm:$0xff] %vm981_vm3, %v774_v19  ;;  %v1357_v21 = vpop.f32.mrb[1].mxu0 }
 0x29f   : > { %793 = vmax.xlane.f32.xlu0 %v2145_v20  ;;  %v777_v22 = vpop.f32.mrb[2].mxu0 }
 0x2a0   : > { %v1358_v23 = vpop.f32.mrb[3].mxu0 }
 0x2b5   : > { %640 = vrot.lane.b32.xlu0 %v2114_v53, %s1759_s27 }
 0x2b9   : > { %644 = vrot.lane.b32.xlu0 %v586_v58, %s1759_s27 }
 0x2bd   : > { %648 = vrot.lane.b32.xlu0 %v594_v61, %s1759_s27  ;;  %v813_v61 = vmax.f32 %v2145_v20, -1e+30 }
 0x2bf   : > { %v814_v62 = vrot.slane %v813_v61, 4 }
 0x2c1   : > { %652 = vrot.lane.b32.xlu0 %v602_v1, %s1759_s27  ;;  %v815_v63 = vmax.f32 %v813_v61, %v814_v62 }
 0x2c5   : > { %884 = vperm.xlu0 %1449, %v865_v34  }
 0x32c   : > { %v794_v39 = vpop.xlane.xlu0 %793 }
 0x32d   : > { %v2161_v40 = vsub.f32 %v2145_v20, %v794_v39 }
 0x32f   : > { %v799_v41 = vmul.f32 1.442695, %v2161_v40 }
 0x330   : > { %v641_v42 = vpop.permute.xlu0 %640 }
 0x331   : > { %1467 = vpow2.f32 %v799_v41  ;;  %680 = vxpose.xlu1.b32.cont [9/16] (narrow) %v641_v42, 8 }
 0x332   : > { %1469 = vlog2.f32 %v914_v46 }
 0x334   : > { %v645_v45 = vpop.permute.xlu0 %644 }
 0x335   : > { %681 = vxpose.xlu1.b32.cont [10/16] (narrow) %v643_v43, 8 }
 0x338   : > { %v649_v48 = vpop.permute.xlu0 %648 }
 0x339   : > { %682 = vxpose.xlu1.b32.cont [11/16] (narrow) %v645_v45, 8 }
 0x33b   : > { %v1468_v14 = vpop.eup %1467 }
 0x33c   : > { %803 = vadd.xlane.f32.xlu0 %v1468_v14  ;;  %v1470_v51 = vpop.eup %1469  ;;  %v653_v53 = vpop.permute.xlu0 %652 }
 0x33d   : > { %683 = vxpose.xlu1.b32.cont [12/16] (narrow) %v647_v47, 8  ;;  %v916_v55 = vmul.f32 0.6931472, %v1470_v51 }
 0x33f   : > { %v922_v58 = vsel %vm921_vm5, %v919_v56, %v916_v55 }
 0x340   : > { %v932_v60 = vsub.f32 %v904_v59, %v922_v58 }
 0x341   : > { %684 = vxpose.xlu1.b32.cont [13/16] (narrow) %v649_v48, 8 }
 0x345   : > { %685 = vxpose.xlu1.b32.cont [14/16] (narrow) %v651_v50, 8 }
 0x349   : > { %686 = vxpose.xlu1.b32.cont [15/16] (narrow) %v653_v53, 8 }
 0x34d   : > { %687 = vxpose.xlu1.b32.end [16/16] (narrow) %v655_v57, 8 }
 0x352   : > { %965 = vperm.xlu0 %1449, %v932_v60  }
 0x353   : > { %1624 = shalt.err (!%p1621_p7)
}
 0x354   : > { %s1625_s19 = scalar_lea.hbm %s2170_s30, 128  ;;  %s1629_s3 = scalar_lea.hbm %s2321_s5, 256 }
 0x355   : > { %p1626_p9 = scmp.ne.s32.totalorder %s2170_s30, %s1625_s19  ;;  %p1630_p11 = scmp.lt.u32.totalorder %s2170_s30, %s2321_s5 }
 0x356   : > { %p1631_p2 = scmp.lt.u32.totalorder %s1629_s3, %s1625_s19  ;;  %p1633_p1 = scmp.lt.u32.totalorder %s1625_s19, %s2170_s30 }
 0x357   : > { %p1627_p0 = pnand %p1626_p9, %p2353_p13 }
 0x358   : > { %p1632_p12 = por %p1631_p2, %p1630_p11 }
 0x359   : > { %p1628_p8 = pneg %p1627_p0 }
 0x35a   : > { %p1634_p6 = por %p1633_p1, %p1632_p12 }
 0x35c   : > { %p1635_p10 = pnand %p1634_p6, %p1628_p8 }
 0x35e   : > { %1638 = shalt.err (!%p1635_p10)
}
 0x35f   : > { %1372 = dma.vmem_to_hbm [thread:$0]  (%p2353_p13), %s1046_s18, 128, %s2170_s30, %s2174_s2   ;;  %v816_v1 = vrot.slane %v815_v63, 2  ;;  %v782_v31 = vshrl.u32 %v781_v15, 7  ;;  %vm979_vm10 = vcmask 131072   ;;  %v885_v58 = vpop.permute.xlu0 %884  ;;  %vm950_vm12 = vcmp.eq.s32.totalorder %v2140_v17, 16 }
 0x360   : > { %s1250_s27 = sshll.u32 %s2028_s14, 4  ;;  %s1287_s18 = sshll.u32 %s1822_s25, 8  ;;  %vm977_vm13 = vcmask 138240  }
 0x361   : > { %v817_v2 = vmax.f32 %v815_v63, %v816_v1  ;;  %v783_v36 = vadd.s32 8, %v782_v31  ;;  %v894_v42 = vsub.s32 0, %v782_v31  ;;  %s2204_s7 = scalar_lea.vmem [#allocation10], %s1250_s27  ;;  %s2217_s15 = scalar_lea.vmem [#allocation13], %s1250_s27 }
 0x362   : > { %s1029_s16 = sshll.u32 %s2204_s7, 4  ;;  %s2226_s26 = scalar_lea.hbm %s2320_s4, %s1287_s18  ;;  %s2213_s16 = int_to_ptr.vmem [resolvable:$true] %s1029_s16 }
 0x363   : > { %v818_v3 = vrot.slane %v817_v2, 1  ;;  %vm954_vm8 = vcmp.eq.s32.totalorder %v783_v36, 8  ;;  %s1006_s10 = scalar_lea.sflag [#allocation4], %s2028_s14  ;;  %s1639_s12 = scalar_lea.vmem %s2213_s16, 256 }
 0x364   : > { %vm956_vm9 = vmand %vm954_vm8, %vm788_vm2  ;;  %p1640_p4 = scmp.ne.s32.totalorder %s2213_s16, %s1639_s12  ;;  %s1762_s20 = smov [#allocation10]  }
 0x365   : > { %v819_v4 = vmax.f32 %v817_v2, %v818_v3  ;;  %s1643_s19 = sshll.u32 %s1762_s20, 4  ;;  %s1644_s19 = int_to_ptr.vmem [resolvable:$false] %s1643_s19 }
 0x366   : > { %p1641_p5 = pnand %p1640_p4, %p2353_p13  ;;  %s1645_s8 = scalar_lea.vmem %s1644_s19, 512 }
 0x367   : > { %v2195_v8 = vsub.f32 %v2145_v20, %v819_v4  ;;  %v821_v0 = vsub.f32 -1e+30, %v819_v4  ;;  %p1646_p7 = scmp.lt.s32.totalorder %s2213_s16, %s1644_s19  ;;  %p1647_p9 = scmp.lt.s32.totalorder %s1645_s8, %s1639_s12 }
 0x368   : > { %p1642_p3 = pneg %p1641_p5 }
 0x369   : > { %v822_v13 = vmul.f32 1.442695, %v2195_v8  ;;  %v824_v18 = vmul.f32 1.442695, %v821_v0  ;;  %p1648_p0 = por %p1647_p9, %p1646_p7 }
 0x36b   : > { %p1649_p8 = pnand %p1648_p0, %p1642_p3 }
 0x391   : > { %v688_v5 = vpop.trf.xlu1 }
 0x392   : > { %v868_v6 = vand.u32 2147483647, %v688_v5  ;;  %v934_v7 = vsub.f32 0.0, %v688_v5  ;;  %v867_v37 = vmin.f32 %v688_v5, 0.0 }
 0x394   : > { %v869_v9 = vsub.f32 0.0, %v868_v6  ;;  %v936_v10 = vand.u32 2147483647, %v934_v7  ;;  %v935_v43 = vmin.f32 %v934_v7, 0.0 }
 0x396   : > { %v870_v11 = vmul.f32 1.442695, %v869_v9  ;;  %v937_v12 = vsub.f32 0.0, %v936_v10 }
 0x398   : > { %1471 = vpow2.f32 %v870_v11  ;;  %v938_v16 = vmul.f32 1.442695, %v937_v12 }
 0x39a   : > { %1473 = vpow2.f32 %v938_v16 }
 0x39b   : > { %1475 = vpow2.f32 %v822_v13 }
 0x39c   : > { %1477 = vpow2.f32 %v824_v18 }
 0x3a2   : > { %v1472_v19 = vpop.eup %1471 }
 0x3a3   : > { %v872_v21 = vadd.f32 1.0, %v1472_v19  ;;  %v875_v24 = vmul.f32 -0.5, %v1472_v19  ;;  %v878_v29 = vand.u32 2147483647, %v1472_v19 }
 0x3a4   : > { %v1474_v22 = vpop.eup %1473 }
 0x3a5   : > { %1479 = vlog2.f32 %v872_v21  ;;  %v940_v23 = vadd.f32 1.0, %v1474_v22  ;;  %v1476_v20 = vpop.eup %1475  ;;  %v943_v26 = vmul.f32 -0.5, %v1474_v22  ;;  %v876_v28 = vadd.f32 1.0, %v875_v24 }
 0x3a6   : > { %v1478_v25 = vpop.eup %1477  ;;  %v946_v32 = vand.u32 2147483647, %v1474_v22  ;;  %vm879_vm6 = vcmp.lt.f32.partialorder %v878_v29, 0.0004427343 }
 0x3a7   : > { %1481 = vlog2.f32 %v940_v23  ;;  %v826_v27 = vadd.f32 %v1478_v25, %v1476_v20  ;;  %v944_v30 = vadd.f32 1.0, %v943_v26  ;;  %v877_v34 = vmul.f32 %v1472_v19, %v876_v28 }
 0x3a8   : > { %vm947_vm7 = vcmp.lt.f32.partialorder %v946_v32, 0.0004427343 }
 0x3a9   : > { %v827_v33 = vrot.slane %v826_v27, 4  ;;  %v945_v39 = vmul.f32 %v1474_v22, %v944_v30 }
 0x3ab   : > { %v828_v44 = vadd.f32 %v827_v33, %v826_v27 }
 0x3ad   : > { %v829_v49 = vrot.slane %v828_v44, 2 }
 0x3af   : > { %v1480_v35 = vpop.eup %1479  ;;  %v830_v52 = vadd.f32 %v829_v49, %v828_v44 }
 0x3b0   : > { %v874_v38 = vmul.f32 0.6931472, %v1480_v35 }
 0x3b1   : > { %v1482_v41 = vpop.eup %1481  ;;  %v831_v55 = vrot.slane %v830_v52, 1 }
 0x3b2   : > { %v880_v45 = vsel %vm879_vm6, %v877_v34, %v874_v38  ;;  %v942_v46 = vmul.f32 0.6931472, %v1482_v41 }
 0x3b3   : > { %v881_v15 = vsub.f32 %v867_v37, %v880_v45  ;;  %v832_v57 = vadd.f32 %v831_v55, %v830_v52 }
 0x3b4   : > { %v948_v14 = vsel %vm947_vm7, %v945_v39, %v942_v46 }
 0x3b5   : > { %v895_v47 = vrot.slane %v881_v15, %v894_v42  ;;  %v949_v48 = vsub.f32 %v935_v43, %v948_v14 }
 0x3b7   : > { %v960_v50 = vrot.slane %v949_v48, %v894_v42  ;;  %v896_v7 = vadd.f32 %v895_v47, %v885_v58 }
 0x3b9   : > { %v962_v51 = vsel %vm956_vm9, %v960_v50, 0.0 }
 0x3ba   : > { %v984_v53 = vand.u32 2147483647, %v962_v51  ;;  %980 = vst.msk [vmem:[%s2204_s7 + $0x8] sm:$0x1] %vm979_vm10, %v962_v51  ;;  %vm992_vm11 = vcmp.ge.f32.partialorder %v962_v51, 0.0 }
 0x3bc   : > { %v986_v54 = vsub.f32 0.0, %v984_v53 }
 0x3be   : > { %v989_v56 = vmul.f32 1.442695, %v986_v54 }
 0x3c0   : > { %1483 = vpow2.f32 %v989_v56 }
 0x3c1   : > { %1485 = vlog2.f32 %v832_v57 }
 0x3c9   : > { %v804_v59 = vpop.xlane.xlu0 %803 }
 0x3ca   : > { %v1484_v60 = vpop.eup %1483  ;;  %1487 = vlog2.f32 %v804_v59 }
 0x3cb   : > { %v994_v61 = vadd.f32 1.0, %v1484_v60  ;;  %v1486_v62 = vpop.eup %1485 }
 0x3cc   : > { %v834_v63 = vmul.f32 0.6931472, %v1486_v62 }
 0x3cd   : > { %1489 = vrcp.f32 %v994_v61 }
 0x3ce   : > { %v835_v4 = vsub.f32 %v2195_v8, %v834_v63 }
 0x3d1   : > { %v966_v10 = vpop.permute.xlu0 %965 }
 0x3d2   : > { %v973_v8 = vsel %vm950_vm12, %v966_v10, 0.0 }
 0x3d4   : > { %v1488_v1 = vpop.eup %1487 }
 0x3d5   : > { %v808_v2 = vmul.f32 0.6931472, %v1488_v1 }
 0x3d7   : > { %v1490_v3 = vpop.eup %1489  ;;  %v811_v5 = vsub.f32 %v2161_v40, %v808_v2 }
 0x3d8   : > { %v1000_v6 = vmul.f32 %v1490_v3, %v1484_v60 }
 0x3d9   : > { %v898_v9 = vadd.f32 %v835_v4, %v811_v5 }
 0x3da   : > { %v1002_v0 = vsel %vm992_vm11, %v1490_v3, %v1000_v6 }
 0x3db   : > { %v900_v40 = vadd.f32 %v898_v9, %v896_v7  ;;  %1004 = vst.msk [vmem:[%s2217_s15 + $0x8] sm:$0x1] %vm979_vm10, %v1002_v0 }
 0x3dd   : > { %v975_v11 = vsel %vm788_vm2, %v900_v40, %v973_v8 }
 0x3de   : > { %978 = vst.msk [vmem:[%s2204_s7] sm:$0xff] %vm977_vm13, %v975_v11  ;;  %v983_v12 = vand.u32 2147483647, %v975_v11 }
 0x3df   : > { %1652 = shalt.err (!%p1649_p8)
}
 0x3e0   : > { %s1653_s0 = scalar_lea.hbm %s2226_s26, 256  ;;  %s1657_s17 = scalar_lea.hbm %s2320_s4, 512 }
 0x3e1   : > { %p1654_p11 = scmp.ne.s32.totalorder %s2226_s26, %s1653_s0  ;;  %p1658_p1 = scmp.lt.u32.totalorder %s2226_s26, %s2320_s4 }
 0x3e2   : > { %p1659_p6 = scmp.lt.u32.totalorder %s1657_s17, %s1653_s0  ;;  %p1661_p4 = scmp.lt.u32.totalorder %s1653_s0, %s2226_s26 }
 0x3e3   : > { %p1655_p2 = pnand %p1654_p11, %p2353_p13 }
 0x3e4   : > { %p1660_p10 = por %p1659_p6, %p1658_p1 }
 0x3e5   : > { %p1656_p12 = pneg %p1655_p2 }
 0x3e6   : > { %p1662_p5 = por %p1661_p4, %p1660_p10 }
 0x3e8   : > { %p1663_p3 = pnand %p1662_p5, %p1656_p12 }
 0x3ea   : > { %1666 = shalt.err (!%p1663_p3)
}
 0x3eb   : > { %s1763_s9 = smov 128   ;;  %s1764_s30 = smov 8   ;;  %v985_v17 = vsub.f32 0.0, %v983_v12  ;;  %vm991_vm14 = vcmp.ge.f32.partialorder %v975_v11, 0.0 }
 0x3ec   : > { %1371 = dma.vmem_to_hbm [thread:$0]  (%p2353_p13), %s2213_s16, 256, %s2226_s26, %s1006_s10, %s1763_s9, %s1763_s9, %s1764_s30  }
 0x3ed   : > { %v987_v13 = vmul.f32 1.442695, %v985_v17  ;;  %s1058_s12 = sshll.u32 %s2217_s15, 4  ;;  %s2267_s16 = scalar_lea.hbm %s2322_s6, %s1287_s18  ;;  %s2260_s12 = int_to_ptr.vmem [resolvable:$true] %s1058_s12 }
 0x3ee   : > { %s1667_s26 = scalar_lea.vmem %s2260_s12, 256  ;;  %s1765_s10 = smov [#allocation13]  }
 0x3ef   : > { %1491 = vpow2.f32 %v987_v13  ;;  %p1668_p7 = scmp.ne.s32.totalorder %s2260_s12, %s1667_s26  ;;  %s1671_s19 = sshll.u32 %s1765_s10, 4  ;;  %s1672_s19 = int_to_ptr.vmem [resolvable:$false] %s1671_s19 }
 0x3f0   : > { %s1673_s8 = scalar_lea.vmem %s1672_s19, 512  ;;  %p1674_p8 = scmp.lt.s32.totalorder %s2260_s12, %s1672_s19 }
 0x3f1   : > { %p1669_p9 = pnand %p1668_p7, %p2353_p13  ;;  %p1675_p11 = scmp.lt.s32.totalorder %s1673_s8, %s1667_s26 }
 0x3f3   : > { %p1670_p0 = pneg %p1669_p9  ;;  %p1676_p2 = por %p1675_p11, %p1674_p8 }
 0x3f5   : > { %p1677_p12 = pnand %p1676_p2, %p1670_p0 }
 0x3f9   : > { %v1492_v16 = vpop.eup %1491 }
 0x3fa   : > { %v993_v18 = vadd.f32 1.0, %v1492_v16 }
 0x3fc   : > { %1493 = vrcp.f32 %v993_v18 }
 0x406   : > { %v1494_v19 = vpop.eup %1493 }
 0x407   : > { %v999_v21 = vmul.f32 %v1494_v19, %v1492_v16 }
 0x409   : > { %v1001_v22 = vsel %vm991_vm14, %v1494_v19, %v999_v21 }
 0x40a   : > { %1003 = vst.msk [vmem:[%s2217_s15] sm:$0xff] %vm977_vm13, %v1001_v22 }
 0x40b   : > { %1680 = shalt.err (!%p1677_p12)
}
 0x40c   : > { %s1681_s25 = scalar_lea.hbm %s2267_s16, 256  ;;  %s1685_s0 = scalar_lea.hbm %s2322_s6, 512 }
 0x40d   : > { %p1682_p1 = scmp.ne.s32.totalorder %s2267_s16, %s1681_s25  ;;  %p1686_p4 = scmp.lt.u32.totalorder %s2267_s16, %s2322_s6 }
 0x40e   : > { %p1687_p5 = scmp.lt.u32.totalorder %s1685_s0, %s1681_s25  ;;  %p1689_p7 = scmp.lt.u32.totalorder %s1681_s25, %s2267_s16 }
 0x40f   : > { %p1683_p6 = pnand %p1682_p1, %p2353_p13 }
 0x410   : > { %p1688_p3 = por %p1687_p5, %p1686_p4 }
 0x411   : > { %p1684_p10 = pneg %p1683_p6 }
 0x412   : > { %p1690_p9 = por %p1689_p7, %p1688_p3 }
 0x414   : > { %p1691_p0 = pnand %p1690_p9, %p1684_p10 }
 0x416   : > { %1694 = shalt.err (!%p1691_p0)
}
 0x417   : > { %1373 = dma.vmem_to_hbm [thread:$0]  (%p2353_p13), %s2260_s12, 256, %s2267_s16, %s2174_s2, %s1763_s9, %s1763_s9, %s1764_s30  }
 0x418 PF: > { %s1073_s17 = sand.u32 1, %s1737_s21   ;;  %p2354_p8 = scmp.ne.s32.totalorder %s2335_s28, 0 }
 0x419   : > { %p2355_p11 = scmp.ge.s32.totalorder %s1749_s24, 2  ;;  %s1074_s27 = scalar_lea.sflag [#allocation4], %s1073_s17 }
 0x41b   : > { %p1392_p2 = pnand %p2355_p11, %p2354_p8 }
 0x41d   : > { %1728 = dma.done.wait (!%p1392_p2), %s1074_s27, 256  }
 0x41e   : > { %1730 = vsyncadd (!%p1392_p2), %s1074_s27, 4294967040  ;;  %s2356_s13 = sadd.s32 4294967294, %s1749_s24  }
 0x41f   : > { %s1082_s7 = sand.u32 1, %s2356_s13  }
 0x420   : > { %s1083_s20 = scalar_lea.sflag [#allocation12], %s1082_s7 }
 0x421   : > { %1732 = dma.done.wait (!%p1392_p2), %s1083_s20, 384  }
 0x422   : > { %1734 = vsyncadd (!%p1392_p2), %s1083_s20, 4294966912  ;;  %s2357_s2 = sld [smem:[#allocation20_spill]]  ;;  %p27_p13 = scmp.ge.s32.totalorder %s1917_s11, 4  }
 0x423   : > { %s2358_s21 = smov %s1741_s22  ;;  %s2359_s22 = smov %s1745_s23 }
 0x424   : > { %s2361_s24 = smov %s1917_s11  ;;  %29 = sbr.rel (!%p27_p13) target bundleno = 14 (0xe), region = 134 }
 0x428   : > { %s2360_s23 = smov %s2357_s2 }
 0x42b   :  { %1097 = vsyncpa [#allocation3], 1 }
 0x42c   :  { %1099 = vsyncpa [#allocation3 + $0x1], 1 }
 0x42d   :  { %1100 = vsyncpa [#allocation6], 1 }
 0x42e   :  { %1102 = vsyncpa [#allocation6 + $0x1], 1 }
 0x42f   :  { %1103 = vsyncpa [#allocation9], 1 }
 0x430   :  { %1104 = vsyncpa [#allocation4], 1 }
 0x431   :  { %1106 = vsyncpa [#allocation4 + $0x1], 1 }
 0x432   :  { %1107 = vsyncpa [#allocation12], 1 }
 0x433   :  { %1109 = vsyncpa [#allocation12 + $0x1], 1 }

</bundles_post_ra>
